<compile_context>
chip_gen: v6e
topology: v6e:2x2x1
jax: 0.10.0
libtpu: 0.0.40
codegen_flags: <defaults>
</compile_context>

<pallas_src>
import functools

import jax
import jax.numpy as jnp
from jax import lax
from jax.experimental import pallas as pl
from jax.experimental.pallas import tpu as pltpu

LANES = 128
SUBLANES = 8


def _round_up(v, m):
    return ((v + m - 1) // m) * m


def _num_tensorcores():
    """Best-effort TensorCore count of the local chip (2 on v7x, else 1)."""
    try:
        kind = jax.devices()[0].device_kind.lower()
    except Exception:
        return 1
    return 2 if ("v7" in kind or "7x" in kind) else 1


def _dice_partial_kernel(x_ref, t_ref, part_ref, *, bpc, nblocks, last_rows,
                         has_dup):
    """Accumulate per-chunk partial sums into the resident output block.

    part_ref block shape: (1, 2, 8, 128)
      [0, 0] += sigmoid(x) * t          (intersection)
      [0, 1] += sigmoid(x) + t          (denominator)
    """
    c = pl.program_id(0)   # chunk axis ("parallel", shards across TCs on v7x)
    j = pl.program_id(1)   # block axis ("arbitrary", carried accumulator)
    blk = c * bpc + j
    last_blk = nblocks - 1

    @pl.when(j == 0)
    def _():
        part_ref[...] = jnp.zeros_like(part_ref)

    def compute(masked):
        x = x_ref[...].astype(jnp.float32)
        t = t_ref[...].astype(jnp.float32)
        # Single-transcendental sigmoid: 1 EUP push + 2 cheap VPU ops.
        s = 0.5 * jnp.tanh(0.5 * x) + 0.5
        st = s * t
        den = s + t
        if masked:
            # Boundary block only: mask rows past the logical end.  Must stay
            # a true select so stale/NaN VMEM beyond the array cannot leak in.
            row = lax.broadcasted_iota(jnp.int32, x.shape, 0)
            valid = row < last_rows
            st = jnp.where(valid, st, 0.0)
            den = jnp.where(valid, den, 0.0)
        # (tile_r,128) -> (tile_r/8, 8, 128) is a free re-blocking of the
        # sublane axis; the axis-0 sum is pure vreg-wise VPU adds (no XLU,
        # no SMEM scalar round-trip on the hot path).
        part_ref[0, 0] += jnp.sum(st.reshape(-1, SUBLANES, LANES), axis=0)
        part_ref[0, 1] += jnp.sum(den.reshape(-1, SUBLANES, LANES), axis=0)

    if last_rows == 0 and not has_dup:
        # Every block is full and in range: single mask-free fast path.
        compute(masked=False)
    elif last_rows == 0:
        # Only clamped duplicate tail blocks exist: skip them, fast path else.
        @pl.when(blk <= last_blk)
        def _():
            compute(masked=False)
    else:
        is_last = blk == last_blk
        fast = jnp.logical_not(is_last)
        if has_dup:
            fast = jnp.logical_and(blk <= last_blk, fast)

        @pl.when(fast)
        def _():
            compute(masked=False)

        @pl.when(is_last)
        def _():
            compute(masked=True)


def dice_loss(inputs, targets, smooth=1.0, *, tile_r=8192, num_chunks=None):
    """Pallas equivalent of DiceLoss.forward(inputs, targets, smooth)."""
    smooth = float(smooth)
    x = inputs.reshape(-1)
    t = targets.reshape(-1)
    n = x.shape[0]
    if n == 0:
        # Matches the reference: dice = smooth / smooth = 1 -> loss = 0.
        return jnp.float32(0.0)

    # Lane-align WITHOUT a full-array pad copy: the <128-element ragged
    # remainder is reduced with plain jnp (tiny); the kernel streams the
    # 128-aligned prefix, which reshapes for free.
    rem = n % LANES
    n_main = n - rem
    if rem:
        xt = x[n_main:].astype(jnp.float32)
        tt = t[n_main:].astype(jnp.float32)
        stail = jax.nn.sigmoid(xt)
        inter_tail = jnp.sum(stail * tt)
        den_tail = jnp.sum(stail) + jnp.sum(tt)
    else:
        inter_tail = jnp.float32(0.0)
        den_tail = jnp.float32(0.0)

    if n_main == 0:
        inter, den = inter_tail, den_tail
    else:
        x2 = (x[:n_main] if rem else x).reshape(-1, LANES)
        t2 = (t[:n_main] if rem else t).reshape(-1, LANES)
        rows = n_main // LANES

        # Big row tiles (8192 x 128 f32 = 4 MiB per input block) amortize the
        # ~0.35 us per-grid-step overhead.  Multiple of 32 keeps bf16/int8
        # sublane packing legal; the 16384 cap keeps the double-buffered
        # footprint inside v7x's 64 MiB physical VMEM.
        tile_r = max(32, min(int(tile_r), 16384, _round_up(rows, 32)))
        nblocks = pl.cdiv(rows, tile_r)

        if num_chunks is None:
            num_chunks = _num_tensorcores()
        num_chunks = max(1, min(int(num_chunks), nblocks))
        bpc = pl.cdiv(nblocks, num_chunks)        # blocks per chunk
        has_dup = (num_chunks * bpc) != nblocks   # clamped duplicate blocks?
        last_rows = rows % tile_r                 # 0 => last block is full

        if has_dup:
            def data_map(c, j):
                # Clamp so the DMA never targets a fully out-of-range block;
                # the kernel skips compute for those duplicates.
                return (jnp.minimum(c * bpc + j, nblocks - 1), 0)
        else:
            def data_map(c, j):
                return (c * bpc + j, 0)

        kernel = functools.partial(_dice_partial_kernel, bpc=bpc,
                                   nblocks=nblocks, last_rows=last_rows,
                                   has_dup=has_dup)

        # 2 inputs x 2 pipeline buffers x block; make sure the scoped VMEM
        # limit covers it on every generation (v5e default is only 16 MiB).
        bytes_per_block = tile_r * LANES * (x2.dtype.itemsize
                                            + t2.dtype.itemsize)
        vmem_limit = int(min(48 * 2**20,
                             max(32 * 2**20, 2 * bytes_per_block + 4 * 2**20)))

        parts = pl.pallas_call(
            kernel,
            out_shape=jax.ShapeDtypeStruct((num_chunks, 2, SUBLANES, LANES),
                                           jnp.float32),
            grid_spec=pltpu.PrefetchScalarGridSpec(
                num_scalar_prefetch=0,
                grid=(num_chunks, bpc),
                in_specs=[
                    pl.BlockSpec((tile_r, LANES), data_map),
                    pl.BlockSpec((tile_r, LANES), data_map),
                ],
                out_specs=pl.BlockSpec((1, 2, SUBLANES, LANES),
                                       lambda c, j: (c, 0, 0, 0)),
            ),
            compiler_params=pltpu.CompilerParams(
                # chunk axis shards across TensorCores (v7x megacore); block
                # axis is a sequential reduction carried in the resident
                # output block.
                dimension_semantics=("parallel", "arbitrary"),
                vmem_limit_bytes=vmem_limit,
            ),
        )(x2, t2)

        # Tiny final combine (one cross-lane reduction per accumulator).
        inter = jnp.sum(parts[:, 0]) + inter_tail
        den = jnp.sum(parts[:, 1]) + den_tail

    dice = (2.0 * inter + smooth) / (den + smooth)
    return 1.0 - dice


def _dice_loss_ref(inputs, targets, smooth=1.0):
    x = jax.nn.sigmoid(inputs.astype(jnp.float32)).reshape(-1)
    t = targets.astype(jnp.float32).reshape(-1)
    inter = jnp.sum(x * t)
    dice = (2.0 * inter + smooth) / (jnp.sum(x) + jnp.sum(t) + smooth)
    return 1.0 - dice


if __name__ == "__main__":
    key = jax.random.PRNGKey(0)
    k1, k2, k3, k4 = jax.random.split(key, 4)

    # NCHW logits and binary targets, as the PyTorch module expects.
    B, C, H, W = 2, 4, 16, 16
    inputs = jax.random.normal(k1, (B, C, H, W), dtype=jnp.float32)
    targets = (jax.random.uniform(k2, (B, C, H, W)) > 0.5).astype(jnp.float32)

    loss = jax.block_until_ready(dice_loss(inputs, targets, smooth=1.0))
    ref = _dice_loss_ref(inputs, targets, smooth=1.0)
    assert jnp.allclose(loss, ref, rtol=1e-5, atol=1e-5), (loss, ref)

    # Binary targets streamed as bf16 (narrow-dtype path; no wrapper cast).
    loss_bf = jax.block_until_ready(
        dice_loss(inputs, targets.astype(jnp.bfloat16), smooth=1.0))
    assert jnp.allclose(loss_bf, ref, rtol=1e-5, atol=1e-5), (loss_bf, ref)

    # Ragged element count (not a multiple of 128) exercises the jnp tail
    # reduction plus the masked boundary-block path.
    inputs2 = jax.random.normal(k3, (1, 3, 7, 11), dtype=jnp.float32)
    targets2 = (jax.random.uniform(k4, (1, 3, 7, 11)) > 0.5).astype(jnp.float32)
    loss2 = jax.block_until_ready(dice_loss(inputs2, targets2, smooth=1.0))
    ref2 = _dice_loss_ref(inputs2, targets2, smooth=1.0)
    assert jnp.allclose(loss2, ref2, rtol=1e-5, atol=1e-5), (loss2, ref2)

    print("KERNEL_OK")
</pallas_src>

<mosaic_0001>
module attributes {stable_mosaic.version = 11 : i64} {
  func.func @_dice_partial_kernel(%arg0: i32, %arg1: i32, %arg2: memref<32x128xf32, #tpu.memory_space<vmem>>, %arg3: memref<32x128xf32, #tpu.memory_space<vmem>>, %arg4: memref<1x2x8x128xf32, #tpu.memory_space<vmem>>) attributes {dimension_semantics = [#tpu.dimension_semantics<parallel>, #tpu.dimension_semantics<arbitrary>], iteration_bounds = array<i64: 1, 1>, scalar_prefetch = 0 : i64, scratch_operands = 0 : i64, tpu.core_type = #tpu.core_type<tc>, window_params = [{transform_indices = @transform_0, window_bounds = array<i64: 32, 128>}, {transform_indices = @transform_1, window_bounds = array<i64: 32, 128>}, {transform_indices = @transform_2, window_bounds = array<i64: 1, 2, 8, 128>}]} {
    %c1_i32 = arith.constant 1 : i32
    %0 = arith.muli %arg0, %c1_i32 : i32
    %1 = arith.addi %0, %arg1 : i32
    %c0_i32 = arith.constant 0 : i32
    %2 = arith.cmpi eq, %arg1, %c0_i32 : i32
    %3 = arith.extui %2 : i1 to i32
    %c0_i32_0 = arith.constant 0 : i32
    %4 = arith.cmpi ne, %3, %c0_i32_0 : i32
    scf.if %4 {
      %cst = arith.constant 0.000000e+00 : f32
      %11 = vector.broadcast %cst : f32 to vector<1x2x8x128xf32>
      %c0 = arith.constant 0 : index
      %c0_4 = arith.constant 0 : index
      %c0_5 = arith.constant 0 : index
      %c0_6 = arith.constant 0 : index
      %12 = vector.load %arg4[%c0, %c0_4, %c0_5, %c0_6] : memref<1x2x8x128xf32, #tpu.memory_space<vmem>>, vector<1x2x8x128xf32>
      tpu.vector_store %arg4[%c0, %c0_4, %c0_5, %c0_6], %11 {strides = array<i32>} : memref<1x2x8x128xf32, #tpu.memory_space<vmem>>, vector<1x2x8x128xf32>,
    } else {
    }
    %c0_i32_1 = arith.constant 0 : i32
    %5 = arith.cmpi eq, %1, %c0_i32_1 : i32
    %true = arith.constant true
    %6 = arith.xori %5, %true : i1
    %7 = arith.extui %6 : i1 to i32
    %c0_i32_2 = arith.constant 0 : i32
    %8 = arith.cmpi ne, %7, %c0_i32_2 : i32
    scf.if %8 {
      %c0 = arith.constant 0 : index
      %c0_4 = arith.constant 0 : index
      %11 = vector.load %arg2[%c0, %c0_4] : memref<32x128xf32, #tpu.memory_space<vmem>>, vector<32x128xf32>
      %c0_5 = arith.constant 0 : index
      %c0_6 = arith.constant 0 : index
      %12 = vector.load %arg3[%c0_5, %c0_6] : memref<32x128xf32, #tpu.memory_space<vmem>>, vector<32x128xf32>
      %cst = arith.constant 5.000000e-01 : f32
      %13 = vector.broadcast %cst : f32 to vector<32x128xf32>
      %14 = arith.mulf %13, %11 : vector<32x128xf32>
      %15 = math.tanh %14 : vector<32x128xf32>
      %cst_7 = arith.constant 5.000000e-01 : f32
      %16 = vector.broadcast %cst_7 : f32 to vector<32x128xf32>
      %17 = arith.mulf %16, %15 : vector<32x128xf32>
      %cst_8 = arith.constant 5.000000e-01 : f32
      %18 = vector.broadcast %cst_8 : f32 to vector<32x128xf32>
      %19 = arith.addf %17, %18 : vector<32x128xf32>
      %20 = arith.mulf %19, %12 : vector<32x128xf32>
      %21 = arith.addf %19, %12 : vector<32x128xf32>
      %c0_9 = arith.constant 0 : index
      %c0_10 = arith.constant 0 : index
      %c0_11 = arith.constant 0 : index
      %c0_12 = arith.constant 0 : index
      %22 = vector.load %arg4[%c0_9, %c0_10, %c0_11, %c0_12] : memref<1x2x8x128xf32, #tpu.memory_space<vmem>>, vector<1x1x8x128xf32>
      %23 = vector.shape_cast %22 : vector<1x1x8x128xf32> to vector<8x128xf32>
      %24 = vector.shape_cast %20 : vector<32x128xf32> to vector<4x8x128xf32>
      %cst_13 = arith.constant dense<0.000000e+00> : vector<8x128xf32>
      %25 = vector.multi_reduction <add>, %24, %cst_13 [0] : vector<4x8x128xf32> to vector<8x128xf32>
      %26 = arith.addf %23, %25 : vector<8x128xf32>
      %c0_14 = arith.constant 0 : index
      %c0_15 = arith.constant 0 : index
      %c0_16 = arith.constant 0 : index
      %c0_17 = arith.constant 0 : index
      %27 = vector.load %arg4[%c0_14, %c0_15, %c0_16, %c0_17] : memref<1x2x8x128xf32, #tpu.memory_space<vmem>>, vector<1x1x8x128xf32>
      %28 = vector.shape_cast %27 : vector<1x1x8x128xf32> to vector<8x128xf32>
      %29 = vector.shape_cast %26 : vector<8x128xf32> to vector<1x1x8x128xf32>
      tpu.vector_store %arg4[%c0_14, %c0_15, %c0_16, %c0_17], %29 {strides = array<i32>} : memref<1x2x8x128xf32, #tpu.memory_space<vmem>>, vector<1x1x8x128xf32>,
      %c0_18 = arith.constant 0 : index
      %c1 = arith.constant 1 : index
      %c0_19 = arith.constant 0 : index
      %c0_20 = arith.constant 0 : index
      %30 = vector.load %arg4[%c0_18, %c1, %c0_19, %c0_20] : memref<1x2x8x128xf32, #tpu.memory_space<vmem>>, vector<1x1x8x128xf32>
      %31 = vector.shape_cast %30 : vector<1x1x8x128xf32> to vector<8x128xf32>
      %32 = vector.shape_cast %21 : vector<32x128xf32> to vector<4x8x128xf32>
      %cst_21 = arith.constant dense<0.000000e+00> : vector<8x128xf32>
      %33 = vector.multi_reduction <add>, %32, %cst_21 [0] : vector<4x8x128xf32> to vector<8x128xf32>
      %34 = arith.addf %31, %33 : vector<8x128xf32>
      %c0_22 = arith.constant 0 : index
      %c1_23 = arith.constant 1 : index
      %c0_24 = arith.constant 0 : index
      %c0_25 = arith.constant 0 : index
      %35 = vector.load %arg4[%c0_22, %c1_23, %c0_24, %c0_25] : memref<1x2x8x128xf32, #tpu.memory_space<vmem>>, vector<1x1x8x128xf32>
      %36 = vector.shape_cast %35 : vector<1x1x8x128xf32> to vector<8x128xf32>
      %37 = vector.shape_cast %34 : vector<8x128xf32> to vector<1x1x8x128xf32>
      tpu.vector_store %arg4[%c0_22, %c1_23, %c0_24, %c0_25], %37 {strides = array<i32>} : memref<1x2x8x128xf32, #tpu.memory_space<vmem>>, vector<1x1x8x128xf32>,
    } else {
    }
    %9 = arith.extui %5 : i1 to i32
    %c0_i32_3 = arith.constant 0 : i32
    %10 = arith.cmpi ne, %9, %c0_i32_3 : i32
    scf.if %10 {
      %c0 = arith.constant 0 : index
      %c0_4 = arith.constant 0 : index
      %11 = vector.load %arg2[%c0, %c0_4] : memref<32x128xf32, #tpu.memory_space<vmem>>, vector<32x128xf32>
      %c0_5 = arith.constant 0 : index
      %c0_6 = arith.constant 0 : index
      %12 = vector.load %arg3[%c0_5, %c0_6] : memref<32x128xf32, #tpu.memory_space<vmem>>, vector<32x128xf32>
      %cst = arith.constant 5.000000e-01 : f32
      %13 = vector.broadcast %cst : f32 to vector<32x128xf32>
      %14 = arith.mulf %13, %11 : vector<32x128xf32>
      %15 = math.tanh %14 : vector<32x128xf32>
      %cst_7 = arith.constant 5.000000e-01 : f32
      %16 = vector.broadcast %cst_7 : f32 to vector<32x128xf32>
      %17 = arith.mulf %16, %15 : vector<32x128xf32>
      %cst_8 = arith.constant 5.000000e-01 : f32
      %18 = vector.broadcast %cst_8 : f32 to vector<32x128xf32>
      %19 = arith.addf %17, %18 : vector<32x128xf32>
      %20 = arith.mulf %19, %12 : vector<32x128xf32>
      %21 = arith.addf %19, %12 : vector<32x128xf32>
      %22 = tpu.iota {dimensions = array<i32: 0>} : vector<32x128xi32>
      %c16_i32 = arith.constant 16 : i32
      %23 = vector.broadcast %c16_i32 : i32 to vector<32x128xi32>
      %24 = arith.cmpi slt, %22, %23 : vector<32x128xi32>
      %cst_9 = arith.constant 0.000000e+00 : f32
      %25 = vector.broadcast %cst_9 : f32 to vector<32x128xf32>
      %26 = arith.select %24, %20, %25 : vector<32x128xi1>, vector<32x128xf32>
      %cst_10 = arith.constant 0.000000e+00 : f32
      %27 = vector.broadcast %cst_10 : f32 to vector<32x128xf32>
      %28 = arith.select %24, %21, %27 : vector<32x128xi1>, vector<32x128xf32>
      %c0_11 = arith.constant 0 : index
      %c0_12 = arith.constant 0 : index
      %c0_13 = arith.constant 0 : index
      %c0_14 = arith.constant 0 : index
      %29 = vector.load %arg4[%c0_11, %c0_12, %c0_13, %c0_14] : memref<1x2x8x128xf32, #tpu.memory_space<vmem>>, vector<1x1x8x128xf32>
      %30 = vector.shape_cast %29 : vector<1x1x8x128xf32> to vector<8x128xf32>
      %31 = vector.shape_cast %26 : vector<32x128xf32> to vector<4x8x128xf32>
      %cst_15 = arith.constant dense<0.000000e+00> : vector<8x128xf32>
      %32 = vector.multi_reduction <add>, %31, %cst_15 [0] : vector<4x8x128xf32> to vector<8x128xf32>
      %33 = arith.addf %30, %32 : vector<8x128xf32>
      %c0_16 = arith.constant 0 : index
      %c0_17 = arith.constant 0 : index
      %c0_18 = arith.constant 0 : index
      %c0_19 = arith.constant 0 : index
      %34 = vector.load %arg4[%c0_16, %c0_17, %c0_18, %c0_19] : memref<1x2x8x128xf32, #tpu.memory_space<vmem>>, vector<1x1x8x128xf32>
      %35 = vector.shape_cast %34 : vector<1x1x8x128xf32> to vector<8x128xf32>
      %36 = vector.shape_cast %33 : vector<8x128xf32> to vector<1x1x8x128xf32>
      tpu.vector_store %arg4[%c0_16, %c0_17, %c0_18, %c0_19], %36 {strides = array<i32>} : memref<1x2x8x128xf32, #tpu.memory_space<vmem>>, vector<1x1x8x128xf32>,
      %c0_20 = arith.constant 0 : index
      %c1 = arith.constant 1 : index
      %c0_21 = arith.constant 0 : index
      %c0_22 = arith.constant 0 : index
      %37 = vector.load %arg4[%c0_20, %c1, %c0_21, %c0_22] : memref<1x2x8x128xf32, #tpu.memory_space<vmem>>, vector<1x1x8x128xf32>
      %38 = vector.shape_cast %37 : vector<1x1x8x128xf32> to vector<8x128xf32>
      %39 = vector.shape_cast %28 : vector<32x128xf32> to vector<4x8x128xf32>
      %cst_23 = arith.constant dense<0.000000e+00> : vector<8x128xf32>
      %40 = vector.multi_reduction <add>, %39, %cst_23 [0] : vector<4x8x128xf32> to vector<8x128xf32>
      %41 = arith.addf %38, %40 : vector<8x128xf32>
      %c0_24 = arith.constant 0 : index
      %c1_25 = arith.constant 1 : index
      %c0_26 = arith.constant 0 : index
      %c0_27 = arith.constant 0 : index
      %42 = vector.load %arg4[%c0_24, %c1_25, %c0_26, %c0_27] : memref<1x2x8x128xf32, #tpu.memory_space<vmem>>, vector<1x1x8x128xf32>
      %43 = vector.shape_cast %42 : vector<1x1x8x128xf32> to vector<8x128xf32>
      %44 = vector.shape_cast %41 : vector<8x128xf32> to vector<1x1x8x128xf32>
      tpu.vector_store %arg4[%c0_24, %c1_25, %c0_26, %c0_27], %44 {strides = array<i32>} : memref<1x2x8x128xf32, #tpu.memory_space<vmem>>, vector<1x1x8x128xf32>,
    } else {
    }
    return
  }
  func.func @transform_0(%arg0: i32, %arg1: i32) -> (i32, i32) {
    %c1_i32 = arith.constant 1 : i32
    %0 = arith.muli %arg0, %c1_i32 : i32
    %1 = arith.addi %0, %arg1 : i32
    %c0_i32 = arith.constant 0 : i32
    %c0_i32_0 = arith.constant 0 : i32
    return %1, %c0_i32 : i32, i32
  }
  func.func @transform_1(%arg0: i32, %arg1: i32) -> (i32, i32) {
    %c1_i32 = arith.constant 1 : i32
    %0 = arith.muli %arg0, %c1_i32 : i32
    %1 = arith.addi %0, %arg1 : i32
    %c0_i32 = arith.constant 0 : i32
    %c0_i32_0 = arith.constant 0 : i32
    return %1, %c0_i32 : i32, i32
  }
  func.func @transform_2(%arg0: i32, %arg1: i32) -> (i32, i32, i32, i32) {
    %c0_i32 = arith.constant 0 : i32
    %c0_i32_0 = arith.constant 0 : i32
    %c0_i32_1 = arith.constant 0 : i32
    %c0_i32_2 = arith.constant 0 : i32
    return %arg0, %c0_i32, %c0_i32_0, %c0_i32_1 : i32, i32, i32, i32
  }
}

</mosaic_0001>

<bundles_post_ra>
// kernel: tpu_custom_call.1
= control target key start
LH: loop header
LB: loop body
LE: loop exit
PB: predicated region body
PF: predicated region fallthrough
CT: control target
= control target key end

     0   :  { %7 = vsyncpa [#allocation3], 0  ;;  %s318_s0 = inlined_call_operand.hbm [shape: f32[16,128], index: 0, kind: input, shape index: {}]   ;;  %s319_s1 = inlined_call_operand.hbm [shape: f32[16,128], index: 1, kind: input, shape index: {}]   ;;  %s320_s2 = inlined_call_operand.hbm [shape: f32[1,2,8,128], index: 2, kind: output, shape index: {}]  }
   0x1   :  { %8 = vsyncpa [#allocation6], 0 }
   0x2   :  { %9 = vsyncpa [#allocation4], 0 }
   0x3   :  { %18 = vsyncadd [#allocation3], 256  ;;  %s280_s9 = smov [#allocation2]  }
   0x4   :  { %s23_s10 = sshll.u32 %s280_s9, 4  ;;  %s24_s10 = int_to_ptr.vmem [resolvable:$true] %s23_s10 }
   0x5   :  { %s222_s11 = scalar_lea.vmem %s24_s10, 256  ;;  %s226_s12 = scalar_lea.vmem %s24_s10, 512 }
   0x6   :  { %p223_p0 = scmp.ne.s32.totalorder %s24_s10, %s222_s11  ;;  %p227_p1 = scmp.lt.s32.totalorder %s24_s10, %s24_s10 }
   0x7   :  { %p228_p2 = scmp.lt.s32.totalorder %s226_s12, %s222_s11 }
   0x9   :  { %p229_p3 = por %p228_p2, %p227_p1 }
   0xb   :  { %p230_p4 = pnand %p229_p3, %p223_p0 }
   0xd   :  { %233 = shalt.err (!%p230_p4)
}
   0xe   :  { %s281_s13 = smov 128   ;;  %s282_s14 = smov 8  }
   0xf   :  { %29 = dma.hbm_to_vmem [thread:$0]  %s318_s0, 256, %s24_s10, [#allocation3], %s281_s13, %s281_s13, %s282_s14  }
  0x10   :  { %38 = vsyncadd [#allocation6], 256  ;;  %s283_s17 = smov [#allocation5]  }
  0x11   :  { %s43_s18 = sshll.u32 %s283_s17, 4  ;;  %s44_s18 = int_to_ptr.vmem [resolvable:$true] %s43_s18 }
  0x12   :  { %s242_s19 = scalar_lea.vmem %s44_s18, 256  ;;  %s246_s20 = scalar_lea.vmem %s44_s18, 512 }
  0x13   :  { %p243_p5 = scmp.ne.s32.totalorder %s44_s18, %s242_s19  ;;  %p247_p6 = scmp.lt.s32.totalorder %s44_s18, %s44_s18 }
  0x14   :  { %p248_p7 = scmp.lt.s32.totalorder %s246_s20, %s242_s19 }
  0x16   :  { %p249_p8 = por %p248_p7, %p247_p6 }
  0x18   :  { %p250_p9 = pnand %p249_p8, %p243_p5 }
  0x1a   :  { %253 = shalt.err (!%p250_p9)
}
  0x1b   :  { %49 = dma.hbm_to_vmem [thread:$0]  %s319_s1, 256, %s44_s18, [#allocation6], %s281_s13, %s281_s13, %s282_s14  }
  0x1c   :  { %274 = dma.done.wait [#allocation3], 512  }
  0x1d   :  { %275 = vsyncadd [#allocation3], 4294966784 }
  0x1e   :  { %276 = dma.done.wait [#allocation6], 512  }
  0x1f   :  { %277 = vsyncadd [#allocation6], 4294966784  ;;  %v124_v0 = vld [vmem:[#allocation2] sm:$0xff]  ;;  %v125_v1 = vld [vmem:[#allocation2 + $0x8] sm:$0xff]  ;;  %s284_s0 = smov [#allocation7]  }
  0x20   :  { %v132_v2 = vmul.f32 0.5, %v124_v0  ;;  %v133_v3 = vmul.f32 0.5, %v125_v1  ;;  %v128_v7 = vld [vmem:[#allocation5] sm:$0xff]  ;;  %v129_v9 = vld [vmem:[#allocation5 + $0x8] sm:$0xff]  ;;  %s191_s1 = sshll.u32 %s284_s0, 4  ;;  %s192_s1 = int_to_ptr.vmem [resolvable:$true] %s191_s1 }
  0x21   :  { %s254_s23 = scalar_lea.vmem %s192_s1, 256  ;;  %p259_p11 = scmp.lt.s32.totalorder %s192_s1, %s192_s1 }
  0x22   :  { %210 = vtanh.f32 %v132_v2  ;;  %p255_p10 = scmp.ne.s32.totalorder %s192_s1, %s254_s23  ;;  %p260_p12 = scmp.lt.s32.totalorder %s254_s23, %s254_s23 }
  0x23   :  { %212 = vtanh.f32 %v133_v3 }
  0x24   :  { %p261_p13 = por %p260_p12, %p259_p11 }
  0x26   :  { %p262_p0 = pnand %p261_p13, %p255_p10 }
  0x2f   :  { %v211_v4 = vpop.eup %210 }
  0x30   :  { %v213_v5 = vpop.eup %212  ;;  %v140_v6 = vmul.f32 0.5, %v211_v4 }
  0x31   :  { %v141_v8 = vmul.f32 0.5, %v213_v5 }
  0x32   :  { %v144_v10 = vadd.f32 0.5, %v140_v6 }
  0x33   :  { %v145_v11 = vadd.f32 0.5, %v141_v8 }
  0x34   :  { %v148_v12 = vmul.f32 %v144_v10, %v128_v7  ;;  %v152_v13 = vadd.f32 %v144_v10, %v128_v7 }
  0x35   :  { %v149_v14 = vmul.f32 %v145_v11, %v129_v9  ;;  %v153_v15 = vadd.f32 %v145_v11, %v129_v9 }
  0x37   :  { %v174_v16 = vadd.f32 %v149_v14, %v148_v12  ;;  %v181_v17 = vadd.f32 %v153_v15, %v152_v13 }
  0x39   :  { %178 = vst [vmem:[#allocation7] sm:$0xff] %v174_v16  ;;  %185 = vst [vmem:[#allocation7 + $0x8] sm:$0xff] %v181_v17 }
  0x3a   :  { %265 = shalt.err (!%p262_p0)
}
  0x3b   :  { %197 = dma.vmem_to_hbm [thread:$0]  %s192_s1, 256, %s320_s2, [#allocation4], %s281_s13, %s281_s13, %s282_s14  }
  0x3c   :  { %278 = dma.done.wait [#allocation4], 256  }
  0x3d   :  { %279 = vsyncadd [#allocation4], 4294967040 }
  0x3e   :  { %201 = vsyncpa [#allocation3], 1 }
  0x3f   :  { %202 = vsyncpa [#allocation6], 1 }
  0x40   :  { %203 = vsyncpa [#allocation4], 1 }

</bundles_post_ra>
